<compile_context>
chip_gen: v6e
topology: v6e:2x2x1
jax: 0.10.0
libtpu: 0.0.40
codegen_flags: <defaults>
</compile_context>

<pallas_src>
import functools

import jax
import jax.numpy as jnp
from jax.experimental import pallas as pl
from jax.experimental.pallas import tpu as pltpu


def _fused_expand_ln_kernel(x_ref, w_ref, b_ref, beta_ref, gmean_ref, gbc_ref, gbcg_ref,
                            o_ref, *, eps):
    """Fused ConvTranspose3d(k==s==(u,u,1)) + per-voxel LayerNorm, voxels on the lane axis.

    x_ref:     (1, Cin, TV)      input voxels (channels-first), TV voxels on lanes
    w_ref:     (UUC, Cin)        weight, rows ordered (i, j, o)
    b_ref:     (UUC, 1)          bias per row (f32)
    beta_ref:  (UUC, 1)          LN beta per row (f32)
    gmean_ref: (UU, UUC)         group-mean matrix: 1/Cout where row // Cout == group
    gbc_ref:   (UUC, UU)         group -> rows broadcast matrix (0/1)
    gbcg_ref:  (UUC, UU)         group -> rows broadcast with gamma folded in
    o_ref:     (1, UUC, TV)      normalized output tile
    """
    x = x_ref[0]                                                                # (Cin, TV)

    # MXU matmul with f32 accumulation, + bias.
    y = jnp.dot(w_ref[...], x, preferred_element_type=jnp.float32) + b_ref[...]  # (UUC, TV)

    # Per-group (= per (i,j) output voxel) mean over the Cout rows, via tiny MXU matmuls
    # (no in-kernel reshape / relayout; columns = voxels stay independent).
    mean_g = jnp.dot(gmean_ref[...], y, preferred_element_type=jnp.float32)      # (UU, TV)
    yc = y - jnp.dot(gbc_ref[...], mean_g, preferred_element_type=jnp.float32)   # (UUC, TV)

    var_g = jnp.dot(gmean_ref[...], yc * yc, preferred_element_type=jnp.float32)  # (UU, TV)
    rstd_g = jax.lax.rsqrt(var_g + eps)
    # gamma folded into the broadcast matmul: scale = gamma * rstd, per row.
    scale = jnp.dot(gbcg_ref[...], rstd_g, preferred_element_type=jnp.float32)    # (UUC, TV)

    o_ref[0] = (yc * scale + beta_ref[...]).astype(o_ref.dtype)


def _round_up(a, b):
    return ((a + b - 1) // b) * b


def patch_expanding_3d(x, weight, bias, gamma, beta, upscaling_factor, *, eps=1e-5):
    """x: (B, Cin, X, Y, Z)  weight: (Cin, Cout, u, u, 1)  bias/gamma/beta: (Cout,)

    Returns (B, Cout, X*u, Y*u, Z), matching nn.ConvTranspose3d(k=s=(u,u,1)) + LayerNorm(Cout).
    Runs in x.dtype (use bf16 activations on v6e/v7x); LN epilogue is always f32.
    """
    B, Cin, X, Y, Z = x.shape
    u = int(upscaling_factor)
    Cout = weight.shape[1]
    UU = u * u
    UUC = UU * Cout
    XYZ = X * Y * Z
    io_dtype = x.dtype

    # --- wrapper-side layout prep (NO input transpose; pure reshape) -------------------------
    x3 = x.reshape(B, Cin, XYZ)

    # weight (Cin, Cout, u, u) -> (i, j, o, c) -> (UUC, Cin); rows ordered (i, j, o).
    wT = jnp.transpose(weight[..., 0], (2, 3, 1, 0)).reshape(UUC, Cin).astype(io_dtype)

    # Hoisted f32 per-row vectors: row r -> channel r % Cout.
    b_col = jnp.tile(bias.astype(jnp.float32), (UU,)).reshape(UUC, 1)
    beta_col = jnp.tile(beta.astype(jnp.float32), (UU,)).reshape(UUC, 1)

    # Grouping matrices for the fused per-voxel LayerNorm (built once, outside the kernel).
    row_grp = jnp.arange(UUC) // Cout                                     # row -> group id
    grp = jnp.arange(UU)
    gmeanT = (grp[:, None] == row_grp[None, :]).astype(jnp.float32) / Cout   # (UU, UUC)
    gbcastT = (row_grp[:, None] == grp[None, :]).astype(jnp.float32)         # (UUC, UU)
    gbcast_gamma = gbcastT * jnp.tile(gamma.astype(jnp.float32), (UU,))[:, None]

    # --- generation-aware tiling & VMEM budget ------------------------------------------------
    try:
        vmem_phys = int(pltpu.get_tpu_info().vmem_capacity_bytes)
    except Exception:
        vmem_phys = 64 << 20                      # conservative default: v7x per-core VMEM
    vmem_cap = int(0.6 * vmem_phys)               # ~38 MiB on v7x, ~76 MiB on v5e/v6e

    elt = jnp.dtype(io_dtype).itemsize
    const_bytes = 2 * (UUC * Cin * elt + 2 * UUC * 4 + UU * UUC * 4 + 2 * UUC * UU * 4)
    # double-buffered in/out tile columns + ~6 tile-sized f32 intermediates (y, mean, yc, ...)
    per_col = 2 * (Cin + UUC) * elt + 6 * UUC * 4

    tv = 128
    for cand in (16384, 8192, 4096, 2048, 1024, 512, 256, 128):
        if const_bytes + cand * per_col <= vmem_cap:
            tv = cand
            break

    if XYZ <= tv:
        if B == 1 and XYZ >= 256:
            # guarantee >=2 grid steps so both v7x TensorCores get a block (no-op on v5e/v6e).
            tv = _round_up(pl.cdiv(XYZ, 2), 128)
        else:
            tv = XYZ          # full extent: legal even when not 128-aligned

    vmem_limit = int(min(max(2 * (const_bytes + tv * per_col), 8 << 20), vmem_cap))

    grid = (B, pl.cdiv(XYZ, tv))

    out2 = pl.pallas_call(
        functools.partial(_fused_expand_ln_kernel, eps=eps),
        out_shape=jax.ShapeDtypeStruct((B, UUC, XYZ), io_dtype),
        grid=grid,
        in_specs=[
            pl.BlockSpec((1, Cin, tv), lambda b, v: (b, 0, v)),
            pl.BlockSpec((UUC, Cin), lambda b, v: (0, 0)),
            pl.BlockSpec((UUC, 1), lambda b, v: (0, 0)),
            pl.BlockSpec((UUC, 1), lambda b, v: (0, 0)),
            pl.BlockSpec((UU, UUC), lambda b, v: (0, 0)),
            pl.BlockSpec((UUC, UU), lambda b, v: (0, 0)),
            pl.BlockSpec((UUC, UU), lambda b, v: (0, 0)),
        ],
        out_specs=pl.BlockSpec((1, UUC, tv), lambda b, v: (b, 0, v)),
        compiler_params=pltpu.CompilerParams(
            dimension_semantics=("parallel", "parallel"),
            vmem_limit_bytes=vmem_limit,
        ),
    )(x3, wT, b_col, beta_col, gmeanT, gbcastT, gbcast_gamma)

    # Single remaining transpose of the big tensor: (b, i, j, o, x, y, z) -> NCXYZ.
    y = out2.reshape(B, u, u, Cout, X, Y, Z)
    y = jnp.transpose(y, (0, 3, 4, 1, 5, 2, 6)).reshape(B, Cout, X * u, Y * u, Z)
    return y


def _reference(x, weight, bias, gamma, beta, u, eps=1e-5):
    """Pure-JAX f32 reference of the same forward pass (for sanity checking)."""
    B, Cin, X, Y, Z = x.shape
    Cout = weight.shape[1]
    y = jnp.einsum("bcxyz,coij->bxiyjzo", x, weight[..., 0])
    y = y.reshape(B, X * u, Y * u, Z, Cout) + bias
    mean = jnp.mean(y, axis=-1, keepdims=True)
    var = jnp.mean((y - mean) ** 2, axis=-1, keepdims=True)
    y = (y - mean) * jax.lax.rsqrt(var + eps) * gamma + beta
    return jnp.transpose(y, (0, 4, 1, 2, 3))


if __name__ == "__main__":
    # Small, deterministic config: in_dim=8, out_dim=4, upscaling_factor=2
    B, Cin, Cout, X, Y, Z, u = 2, 8, 4, 8, 8, 4, 2

    key = jax.random.PRNGKey(0)
    kx, kw, kb, kg, kbe = jax.random.split(key, 5)
    x = jax.random.normal(kx, (B, Cin, X, Y, Z), dtype=jnp.float32)
    # ConvTranspose3d weight: (in_channels, out_channels, kX, kY, kZ) = (Cin, Cout, u, u, 1)
    weight = jax.random.normal(kw, (Cin, Cout, u, u, 1), dtype=jnp.float32) * 0.1
    bias = jax.random.normal(kb, (Cout,), dtype=jnp.float32) * 0.1
    gamma = 1.0 + 0.1 * jax.random.normal(kg, (Cout,), dtype=jnp.float32)
    beta = 0.1 * jax.random.normal(kbe, (Cout,), dtype=jnp.float32)

    ref = jax.block_until_ready(_reference(x, weight, bias, gamma, beta, u))

    # f32 path: tight check against the f32 reference.
    out = jax.block_until_ready(patch_expanding_3d(x, weight, bias, gamma, beta, u))
    assert out.shape == (B, Cout, X * u, Y * u, Z), out.shape
    assert jnp.allclose(out, ref, atol=1e-4, rtol=1e-4), float(jnp.max(jnp.abs(out - ref)))

    # bf16 I/O path (recommended on v6e/v7x): same kernel, bf16 streams, f32 epilogue.
    # Checked loosely: bf16 rounding through a 4-sample LayerNorm amplifies per-element error.
    out_bf = jax.block_until_ready(
        patch_expanding_3d(x.astype(jnp.bfloat16), weight, bias, gamma, beta, u))
    assert out_bf.shape == (B, Cout, X * u, Y * u, Z)
    assert out_bf.dtype == jnp.bfloat16
    out_bf_f32 = out_bf.astype(jnp.float32)
    assert bool(jnp.isfinite(out_bf_f32).all())
    assert float(jnp.mean(jnp.abs(out_bf_f32 - ref))) < 5e-2

    print("KERNEL_OK")
</pallas_src>

<mosaic_0001>
module attributes {stable_mosaic.version = 11 : i64} {
  func.func @_fused_expand_ln_kernel(%arg0: i32, %arg1: i32, %arg2: memref<1x8x256xf32, #tpu.memory_space<vmem>>, %arg3: memref<16x8xf32, #tpu.memory_space<vmem>>, %arg4: memref<16x1xf32, #tpu.memory_space<vmem>>, %arg5: memref<16x1xf32, #tpu.memory_space<vmem>>, %arg6: memref<4x16xf32, #tpu.memory_space<vmem>>, %arg7: memref<16x4xf32, #tpu.memory_space<vmem>>, %arg8: memref<16x4xf32, #tpu.memory_space<vmem>>, %arg9: memref<1x16x256xf32, #tpu.memory_space<vmem>>) attributes {dimension_semantics = [#tpu.dimension_semantics<parallel>, #tpu.dimension_semantics<parallel>], iteration_bounds = array<i64: 2, 1>, scalar_prefetch = 0 : i64, scratch_operands = 0 : i64, tpu.core_type = #tpu.core_type<tc>, window_params = [{transform_indices = @transform_0, window_bounds = array<i64: 1, 8, 256>}, {pipeline_mode = #tpu.pipeline_mode<synchronous>, transform_indices = @transform_1, window_bounds = array<i64: 16, 8>}, {pipeline_mode = #tpu.pipeline_mode<synchronous>, transform_indices = @transform_2, window_bounds = array<i64: 16, 1>}, {pipeline_mode = #tpu.pipeline_mode<synchronous>, transform_indices = @transform_3, window_bounds = array<i64: 16, 1>}, {pipeline_mode = #tpu.pipeline_mode<synchronous>, transform_indices = @transform_4, window_bounds = array<i64: 4, 16>}, {pipeline_mode = #tpu.pipeline_mode<synchronous>, transform_indices = @transform_5, window_bounds = array<i64: 16, 4>}, {pipeline_mode = #tpu.pipeline_mode<synchronous>, transform_indices = @transform_6, window_bounds = array<i64: 16, 4>}, {transform_indices = @transform_7, window_bounds = array<i64: 1, 16, 256>}]} {
    %c0 = arith.constant 0 : index
    %c0_0 = arith.constant 0 : index
    %c0_1 = arith.constant 0 : index
    %0 = vector.load %arg2[%c0, %c0_0, %c0_1] : memref<1x8x256xf32, #tpu.memory_space<vmem>>, vector<1x8x256xf32>
    %1 = vector.shape_cast %0 : vector<1x8x256xf32> to vector<8x256xf32>
    %c0_2 = arith.constant 0 : index
    %c0_3 = arith.constant 0 : index
    %2 = vector.load %arg3[%c0_2, %c0_3] : memref<16x8xf32, #tpu.memory_space<vmem>>, vector<16x8xf32>
    %cst = arith.constant dense<0.000000e+00> : vector<16x256xf32>
    %3 = tpu.matmul %2, %1, %cst {dimension_numbers = #tpu.dot_dimension_numbers<[1], [0], [0], [1], [0, 0, 1, 1], [], []>} : vector<16x8xf32>, vector<8x256xf32>, vector<16x256xf32> -> vector<16x256xf32>
    %c0_4 = arith.constant 0 : index
    %c0_5 = arith.constant 0 : index
    %4 = vector.load %arg4[%c0_4, %c0_5] : memref<16x1xf32, #tpu.memory_space<vmem>>, vector<16x1xf32>
    %5 = vector.broadcast %4 : vector<16x1xf32> to vector<16x256xf32>
    %6 = arith.addf %3, %5 : vector<16x256xf32>
    %c0_6 = arith.constant 0 : index
    %c0_7 = arith.constant 0 : index
    %7 = vector.load %arg6[%c0_6, %c0_7] : memref<4x16xf32, #tpu.memory_space<vmem>>, vector<4x16xf32>
    %cst_8 = arith.constant dense<0.000000e+00> : vector<4x256xf32>
    %8 = tpu.matmul %7, %6, %cst_8 {dimension_numbers = #tpu.dot_dimension_numbers<[1], [0], [0], [1], [0, 0, 1, 1], [], []>} : vector<4x16xf32>, vector<16x256xf32>, vector<4x256xf32> -> vector<4x256xf32>
    %c0_9 = arith.constant 0 : index
    %c0_10 = arith.constant 0 : index
    %9 = vector.load %arg7[%c0_9, %c0_10] : memref<16x4xf32, #tpu.memory_space<vmem>>, vector<16x4xf32>
    %cst_11 = arith.constant dense<0.000000e+00> : vector<16x256xf32>
    %10 = tpu.matmul %9, %8, %cst_11 {dimension_numbers = #tpu.dot_dimension_numbers<[1], [0], [0], [1], [0, 0, 1, 1], [], []>} : vector<16x4xf32>, vector<4x256xf32>, vector<16x256xf32> -> vector<16x256xf32>
    %11 = arith.subf %6, %10 : vector<16x256xf32>
    %c0_12 = arith.constant 0 : index
    %c0_13 = arith.constant 0 : index
    %12 = vector.load %arg6[%c0_12, %c0_13] : memref<4x16xf32, #tpu.memory_space<vmem>>, vector<4x16xf32>
    %13 = arith.mulf %11, %11 : vector<16x256xf32>
    %cst_14 = arith.constant dense<0.000000e+00> : vector<4x256xf32>
    %14 = tpu.matmul %12, %13, %cst_14 {dimension_numbers = #tpu.dot_dimension_numbers<[1], [0], [0], [1], [0, 0, 1, 1], [], []>} : vector<4x16xf32>, vector<16x256xf32>, vector<4x256xf32> -> vector<4x256xf32>
    %cst_15 = arith.constant 9.99999974E-6 : f32
    %15 = vector.broadcast %cst_15 : f32 to vector<4x256xf32>
    %16 = arith.addf %14, %15 : vector<4x256xf32>
    %17 = math.rsqrt %16 : vector<4x256xf32>
    %c0_16 = arith.constant 0 : index
    %c0_17 = arith.constant 0 : index
    %18 = vector.load %arg8[%c0_16, %c0_17] : memref<16x4xf32, #tpu.memory_space<vmem>>, vector<16x4xf32>
    %cst_18 = arith.constant dense<0.000000e+00> : vector<16x256xf32>
    %19 = tpu.matmul %18, %17, %cst_18 {dimension_numbers = #tpu.dot_dimension_numbers<[1], [0], [0], [1], [0, 0, 1, 1], [], []>} : vector<16x4xf32>, vector<4x256xf32>, vector<16x256xf32> -> vector<16x256xf32>
    %20 = arith.mulf %11, %19 : vector<16x256xf32>
    %c0_19 = arith.constant 0 : index
    %c0_20 = arith.constant 0 : index
    %21 = vector.load %arg5[%c0_19, %c0_20] : memref<16x1xf32, #tpu.memory_space<vmem>>, vector<16x1xf32>
    %22 = vector.broadcast %21 : vector<16x1xf32> to vector<16x256xf32>
    %23 = arith.addf %20, %22 : vector<16x256xf32>
    %c0_21 = arith.constant 0 : index
    %c0_22 = arith.constant 0 : index
    %c0_23 = arith.constant 0 : index
    %24 = vector.load %arg9[%c0_21, %c0_22, %c0_23] : memref<1x16x256xf32, #tpu.memory_space<vmem>>, vector<1x16x256xf32>
    %25 = vector.shape_cast %24 : vector<1x16x256xf32> to vector<16x256xf32>
    %26 = vector.shape_cast %23 : vector<16x256xf32> to vector<1x16x256xf32>
    tpu.vector_store %arg9[%c0_21, %c0_22, %c0_23], %26 {strides = array<i32>} : memref<1x16x256xf32, #tpu.memory_space<vmem>>, vector<1x16x256xf32>,
    return
  }
  func.func @transform_0(%arg0: i32, %arg1: i32) -> (i32, i32, i32) {
    %c0_i32 = arith.constant 0 : i32
    %c0_i32_0 = arith.constant 0 : i32
    return %arg0, %c0_i32, %arg1 : i32, i32, i32
  }
  func.func @transform_1(%arg0: i32, %arg1: i32) -> (i32, i32) {
    %c0_i32 = arith.constant 0 : i32
    %c0_i32_0 = arith.constant 0 : i32
    %c0_i32_1 = arith.constant 0 : i32
    return %c0_i32, %c0_i32_0 : i32, i32
  }
  func.func @transform_2(%arg0: i32, %arg1: i32) -> (i32, i32) {
    %c0_i32 = arith.constant 0 : i32
    %c0_i32_0 = arith.constant 0 : i32
    %c0_i32_1 = arith.constant 0 : i32
    return %c0_i32, %c0_i32_0 : i32, i32
  }
  func.func @transform_3(%arg0: i32, %arg1: i32) -> (i32, i32) {
    %c0_i32 = arith.constant 0 : i32
    %c0_i32_0 = arith.constant 0 : i32
    %c0_i32_1 = arith.constant 0 : i32
    return %c0_i32, %c0_i32_0 : i32, i32
  }
  func.func @transform_4(%arg0: i32, %arg1: i32) -> (i32, i32) {
    %c0_i32 = arith.constant 0 : i32
    %c0_i32_0 = arith.constant 0 : i32
    %c0_i32_1 = arith.constant 0 : i32
    return %c0_i32, %c0_i32_0 : i32, i32
  }
  func.func @transform_5(%arg0: i32, %arg1: i32) -> (i32, i32) {
    %c0_i32 = arith.constant 0 : i32
    %c0_i32_0 = arith.constant 0 : i32
    %c0_i32_1 = arith.constant 0 : i32
    return %c0_i32, %c0_i32_0 : i32, i32
  }
  func.func @transform_6(%arg0: i32, %arg1: i32) -> (i32, i32) {
    %c0_i32 = arith.constant 0 : i32
    %c0_i32_0 = arith.constant 0 : i32
    %c0_i32_1 = arith.constant 0 : i32
    return %c0_i32, %c0_i32_0 : i32, i32
  }
  func.func @transform_7(%arg0: i32, %arg1: i32) -> (i32, i32, i32) {
    %c0_i32 = arith.constant 0 : i32
    %c0_i32_0 = arith.constant 0 : i32
    return %arg0, %c0_i32, %arg1 : i32, i32, i32
  }
}

</mosaic_0001>

<bundles_post_ra>
// kernel: tpu_custom_call.1
= control target key start
LH: loop header
LB: loop body
LE: loop exit
PB: predicated region body
PF: predicated region fallthrough
CT: control target
= control target key end

     0   :  { %12 = vsyncpa [#allocation3], 0  ;;  %s1250_s0 = inlined_call_operand.vmem [shape: f32[2,8,256], index: 0, kind: input, shape index: {}]   ;;  %s1251_s1 = inlined_call_operand.vmem [shape: f32[16,8], index: 1, kind: input, shape index: {}]   ;;  %s1252_s2 = inlined_call_operand.vmem [shape: f32[16,1], index: 2, kind: input, shape index: {}]   ;;  %s1253_s3 = inlined_call_operand.vmem [shape: f32[16,1], index: 3, kind: input, shape index: {}]   ;;  %s1254_s4 = inlined_call_operand.vmem [shape: f32[4,16], index: 4, kind: input, shape index: {}]   ;;  %s1255_s5 = inlined_call_operand.vmem [shape: f32[16,4], index: 5, kind: input, shape index: {}]   ;;  %s1256_s6 = inlined_call_operand.vmem [shape: f32[16,4], index: 6, kind: input, shape index: {}]   ;;  %s1257_s7 = inlined_call_operand.hbm [shape: f32[2,16,256], index: 7, kind: output, shape index: {}]  }
   0x1   :  { %14 = vsyncpa [#allocation3 + $0x1], 0  ;;  %s1085_s24 = smov 0   ;;  %s1087_s25 = smov 0  }
   0x2   :  { %s1089_s26 = smov 0   ;;  %s1091_s27 = smov 0  }
   0x3   :  { %s1093_s28 = smov 0   ;;  %s1095_s29 = smov 0  }
   0x4 LB: > { %s868_s30 = sadd.s32 4294967295, %s1038_s29   ;;  %s869_s8 = sadd.s32 4294967294, %s1038_s29   ;;  %s1038_s29 = sphi %s1095_s29, %s20_s29   ;;  %s1034_s28 = sphi %s1093_s28, %s1264_s28   ;;  %s1030_s27 = sphi %s1091_s27, %s1263_s27   ;;  %s1026_s26 = sphi %s1089_s26, %s1262_s26   ;;  %s1022_s25 = sphi %s1087_s25, %s1261_s25   ;;  %s1018_s24 = sphi %s1085_s24, %s1260_s24  }
   0x5   : > { %s32_s9 = sadd.s32 1, %s1034_s28  ;;  %s195_s10 = sadd.s32 1, %s1026_s26 }
   0x6   : > { %p34_p0 = scmp.ge.s32.totalorder %s32_s9, 2  ;;  %p205_p1 = scmp.ne.s32.totalorder %s1026_s26, %s1022_s25 }
   0x7   : > { %p206_p2 = scmp.eq.s32.totalorder %s868_s30, 1  ;;  %p211_p3 = scmp.ne.s32.totalorder %s1022_s25, %s1018_s24 }
   0x8   : > { %s1266_s9 = smov (%p34_p0, %s32_s9), 0  ;;  %p212_p5 = scmp.eq.s32.totalorder %s869_s8, 1 }
   0x9   : > { %p1125_p4 = por %p206_p2, %p205_p1  ;;  %s190_s12 = ssub.s32 %s1034_s28, %s1266_s9 }
   0xa   : > { %p872_p6 = scmp.ge.s32.totalorder %s1038_s29, 1  ;;  %p193_p7 = scmp.eq.s32.totalorder %s190_s12, 0 }
   0xb   : > { %p1132_p8 = por %p212_p5, %p211_p3  ;;  %p261_p9 = scmp.lt.s32.totalorder %s1038_s29, 3 }
   0xc   : > { %s1138_s14 = scalar_select %p193_p7, %s1026_s26, %s195_s10  }
   0xd   : > { %p262_p10 = pnand %p872_p6, %p261_p9 }
   0xe   : > { %p298_p11 = scmp.lt.s32.totalorder (!%p262_p10), %s1030_s27, 1  ;;  %s294_s16 = sand.u32 (!%p262_p10), 1, %s1022_s25  }
   0xf   : > { %265 = sbr.rel (%p262_p10) target bundleno = 1062 (0x426), region = 48  ;;  %s894_s20 = sshll.u32 (!%p262_p10), %s1030_s27, 9 }
  0x10   : > { %s1203_s23 = scalar_lea.hbm (!%p262_p10), %s1257_s7, %s894_s20  ;;  %s1205_s30 = scalar_lea.sflag (!%p262_p10), [#allocation3], %s294_s16 }
  0x11   : > { %s1042_s8 = smov (!%p262_p10), [#allocation2]  }
  0x12   : > { %s966_s10 = sshll.u32 (!%p262_p10), %s1042_s8, 4  ;;  %s967_s10 = int_to_ptr.vmem [resolvable:$false] %s966_s10 }
  0x13   : > { %s968_s12 = scalar_lea.vmem (!%p262_p10), %s967_s10, 1024 }
  0x14   : > { %v1040_v0 = vmov 0.0   ;;  %v313_v1 = vld [vmem:[%s1252_s2 + $0x8] sm:$0xff]  ;;  %s299_s17 = scalar_select %p298_p11, %s1030_s27, 1  ;;  %v1041_v2 = vmov 0   ;;  %v310_v3 = vld [vmem:[%s1251_s1] sm:$0xff]  ;;  %vm324_vm0 = vcmask 64512  }
  0x15   : > { %395 = vmatprep.mubr.f32.mxu0 %v1040_v0  ;;  %401 = vmatprep.mubr.f32.mxu1 %v1040_v0  ;;  %v311_v6 = vld [vmem:[%s1251_s1 + $0x8] sm:$0xff]  ;;  %v312_v7 = vld [vmem:[%s1252_s2] sm:$0xff]  ;;  %vm409_vm1 = vcmask 130048   ;;  %vm493_vm2 = vcmask 1043456   ;;  %vm486_vm3 = vcmask 31744  }
  0x16   : > { %956 = vset.pattern.permute.xlu0 %v1041_v2  ;;  %957 = vset.pattern.permute.xlu1 %v1041_v2  ;;  %s893_s18 = sshll.u32 %s299_s17, 4  ;;  %v408_v18 = vld [vmem:[%s1254_s4] sm:$0xf]  ;;  %v485_v22 = vld [vmem:[%s1255_s5 + $0x8] sm:$0xff]  ;;  %s873_s17 = sshll.u32 %s294_s16, 5 }
  0x17   : > { %321 = vperm.xlu0 %956, %v313_v1   ;;  %s305_s21 = scalar_lea.vmem %s1250_s0, %s893_s18  ;;  %v484_v21 = vld [vmem:[%s1255_s5] sm:$0xff]  ;;  %v754_v36 = vld [vmem:[%s1253_s3 + $0x8] sm:$0xff]  ;;  %s296_s18 = scalar_lea.vmem [#allocation2], %s873_s17 }
  0x18   : > { %v309_v4 = vld [vmem:[%s305_s21 + $0x8] sm:$0xff]  ;;  %v308_v5 = vld [vmem:[%s305_s21] sm:$0xff]  ;;  %s789_s19 = sshll.u32 %s296_s18, 4  ;;  %s1198_s19 = int_to_ptr.vmem [resolvable:$true] %s789_s19 }
  0x19   : > { %361 = vmatprep.subr.mxu0 %v309_v4  ;;  %895 = vmatprep.subr.mxu1 %v309_v4  ;;  %v753_v35 = vld [vmem:[%s1253_s3] sm:$0xff]  ;;  %v659_v44 = vld [vmem:[%s1256_s6 + $0x8] sm:$0xff]  ;;  %s962_s27 = scalar_lea.vmem %s1198_s19, 512  ;;  %p969_p1 = scmp.lt.s32.totalorder %s1198_s19, %s967_s10 }
  0x1a   : > { %362 = vmatpush1.msra.mxu0 %v308_v5  ;;  %896 = vmatpush1.msra.mxu1 %v308_v5  ;;  %v658_v42 = vld [vmem:[%s1256_s6] sm:$0xff]  ;;  %p963_p12 = scmp.ne.s32.totalorder %s1198_s19, %s962_s27  ;;  %p970_p2 = scmp.lt.s32.totalorder %s968_s12, %s962_s27 }
  0x1b   : > { %876 = vmatmul.mubr.msk.f32.vlgmr.msra.gmra.mxu0 %vm324_vm0, %v310_v3  ;;  %877 = vmatmul.mubr.msk.f32.vlgmr.msra.gmra.mxu1 %vm324_vm0, %v311_v6 }
  0x1c   : > { %316 = vperm.xlu0 %956, %v312_v7   ;;  %477 = vmatprep.mubr.f32.mxu1 %v1040_v0  ;;  %p964_p13 = pnand %p963_p12, %p1125_p4  ;;  %p971_p3 = por %p970_p2, %p969_p1 }
  0x1d   : > { %649 = vmatprep.mubr.f32.mxu0 %v1040_v0  ;;  %757 = vperm.xlu1 %957, %v753_v35  }
  0x1e   : > { %p965_p0 = pneg %p964_p13 }
  0x20   : > { %p972_p5 = pnand %p971_p3, %p965_p0 }
  0x21   : > { %762 = vperm.xlu1 %957, %v754_v36  }
  0x92   : > { %v322_v8 = vpop.permute.xlu0 %321 }
  0x97   : > { %v317_v13 = vpop.permute.xlu0 %316 }
  0x98   : > { %v758_v46 = vpop.permute.xlu1 %757 }
  0x9c   : > { %v763_v54 = vpop.permute.xlu1 %762 }
  0xdb   : > { %v397_v9 = vpop.f32.mrf.mxu0  ;;  %v403_v10 = vpop.f32.mrf.mxu1 }
  0xdc   : > { %v404_v15 = vadd.f32 %v403_v10, %v322_v8  ;;  %v398_v17 = vadd.f32 %v397_v9, %v317_v13 }
  0xdd   : > { %v399_v11 = vpop.f32.mrf.mxu0  ;;  %v405_v12 = vpop.f32.mrf.mxu1 }
  0xde   : > { %v406_v14 = vadd.f32 %v405_v12, %v322_v8  ;;  %v400_v16 = vadd.f32 %v399_v11, %v317_v13 }
  0xe0   : > { %441 = vmatprep.subr.mxu1 %v406_v14 }
  0xe1   : > { %442 = vmatpush1.msra.mxu1 %v404_v15 }
  0xe2   : > { %443 = vmatprep.subr.mxu1 %v400_v16 }
  0xe3   : > { %444 = vmatpush1.msra.mxu1 %v398_v17 }
  0xe4   : > { %878 = vmatmul.mubr.msk.f32.vlgmr.msra.gmra.mxu1 %vm409_vm1, %v408_v18 }
  0xe5   : > { %564 = vmatprep.mubr.f32.mxu1 %v1040_v0 }
 0x1a4   : > { %v479_v19 = vpop.f32.mrf.mxu1 }
 0x1a6   : > { %v481_v20 = vpop.f32.mrf.mxu1 }
 0x1a7   : > { %879 = vmatprep.subr.msk.mxu1 %vm493_vm2, %v481_v20 }
 0x1a8   : > { %880 = vmatpush1.msk.msra.mxu1 %vm493_vm2, %v479_v19 }
 0x1a9   : > { %881 = vmatmul.mubr.msk.f32.vlgmr.msra.gmra.mxu1 %vm486_vm3, %v484_v21 }
 0x1aa   : > { %570 = vmatprep.mubr.f32.mxu1 %v1040_v0 }
 0x1ad   : > { %882 = vmatmul.mubr.msk.f32.gmra.mxu1 %vm486_vm3, %v485_v22 }
 0x269   : > { %v566_v23 = vpop.f32.mrf.mxu1 }
 0x26a   : > { %v577_v30 = vsub.f32 %v398_v17, %v566_v23 }
 0x26b   : > { %v568_v24 = vpop.f32.mrf.mxu1 }
 0x26c   : > { %v578_v28 = vsub.f32 %v400_v16, %v568_v24  ;;  %v581_v34 = vmul.f32 %v577_v30, %v577_v30 }
 0x26d   : > { %v572_v25 = vpop.f32.mrf.mxu1 }
 0x26e   : > { %v579_v26 = vsub.f32 %v404_v15, %v572_v25  ;;  %v582_v33 = vmul.f32 %v578_v28, %v578_v28 }
 0x26f   : > { %v574_v27 = vpop.f32.mrf.mxu1 }
 0x270   : > { %v580_v29 = vsub.f32 %v406_v14, %v574_v27  ;;  %v583_v32 = vmul.f32 %v579_v26, %v579_v26 }
 0x272   : > { %v584_v31 = vmul.f32 %v580_v29, %v580_v29 }
 0x274   : > { %613 = vmatprep.subr.mxu0 %v584_v31 }
 0x275   : > { %614 = vmatpush1.msra.mxu0 %v583_v32 }
 0x276   : > { %615 = vmatprep.subr.mxu0 %v582_v33 }
 0x277   : > { %616 = vmatpush1.msra.mxu0 %v581_v34 }
 0x278   : > { %883 = vmatmul.mubr.msk.f32.vlgmr.msra.gmra.mxu0 %vm409_vm1, %v408_v18 }
 0x279   : > { %736 = vmatprep.mubr.f32.mxu0 %v1040_v0 }
 0x338   : > { %v651_v37 = vpop.f32.mrf.mxu0 }
 0x339   : > { %v652_v38 = vadd.f32 1e-05, %v651_v37 }
 0x33a   : > { %v653_v39 = vpop.f32.mrf.mxu0 }
 0x33b   : > { %v654_v40 = vadd.f32 1e-05, %v653_v39 }
 0x33d   : > { %958 = vrsqrt.f32 %v654_v40 }
 0x33e   : > { %960 = vrsqrt.f32 %v652_v38 }
 0x34a   : > { %v959_v41 = vpop.eup %958 }
 0x34b   : > { %v961_v43 = vpop.eup %960  ;;  %884 = vmatprep.subr.msk.mxu0 %vm493_vm2, %v959_v41 }
 0x34c   : > { %885 = vmatpush1.msk.msra.mxu0 %vm493_vm2, %v961_v43 }
 0x34d   : > { %886 = vmatmul.mubr.msk.f32.vlgmr.msra.gmra.mxu0 %vm486_vm3, %v658_v42 }
 0x34e   : > { %742 = vmatprep.mubr.f32.mxu0 %v1040_v0 }
 0x351   : > { %887 = vmatmul.mubr.msk.f32.gmra.mxu0 %vm486_vm3, %v659_v44 }
 0x40d   : > { %v738_v45 = vpop.f32.mrf.mxu0 }
 0x40e   : > { %v749_v47 = vmul.f32 %v738_v45, %v577_v30 }
 0x40f   : > { %v740_v48 = vpop.f32.mrf.mxu0 }
 0x410   : > { %v765_v49 = vadd.f32 %v758_v46, %v749_v47  ;;  %v750_v50 = vmul.f32 %v740_v48, %v578_v28 }
 0x411   : > { %v744_v51 = vpop.f32.mrf.mxu0 }
 0x412   : > { %769 = vst [vmem:[%s296_s18] sm:$0xff] %v765_v49  ;;  %v766_v52 = vadd.f32 %v758_v46, %v750_v50  ;;  %v751_v53 = vmul.f32 %v744_v51, %v579_v26 }
 0x413   : > { %v746_v55 = vpop.f32.mrf.mxu0 }
 0x414   : > { %770 = vst [vmem:[%s296_s18 + $0x8] sm:$0xff] %v766_v52  ;;  %v767_v56 = vadd.f32 %v763_v54, %v751_v53  ;;  %v752_v57 = vmul.f32 %v746_v55, %v580_v29 }
 0x416   : > { %771 = vst [vmem:[%s296_s18 + $0x10] sm:$0xff] %v767_v56  ;;  %v768_v58 = vadd.f32 %v763_v54, %v752_v57 }
 0x418   : > { %772 = vst [vmem:[%s296_s18 + $0x18] sm:$0xff] %v768_v58 }
 0x419   : > { %975 = shalt.err (!%p972_p5)
}
 0x41a   : > { %s976_s15 = scalar_lea.hbm %s1203_s23, 512  ;;  %s980_s18 = scalar_lea.hbm %s1257_s7, 1024 }
 0x41b   : > { %p977_p6 = scmp.ne.s32.totalorder %s1203_s23, %s976_s15  ;;  %p981_p10 = scmp.lt.s32.totalorder %s1203_s23, %s1257_s7 }
 0x41c   : > { %p982_p11 = scmp.lt.s32.totalorder %s980_s18, %s976_s15 }
 0x41d   : > { %p978_p7 = pnand %p977_p6, %p1125_p4 }
 0x41e   : > { %p983_p12 = por %p982_p11, %p981_p10 }
 0x41f   : > { %p979_p9 = pneg %p978_p7 }
 0x421   : > { %p984_p13 = pnand %p983_p12, %p979_p9 }
 0x423   : > { %987 = shalt.err (!%p984_p13)
}
 0x424   : > { %s1043_s22 = smov 256   ;;  %s1044_s27 = smov 16  }
 0x425   : > { %897 = dma.vmem_to_hbm [thread:$0]  (%p1125_p4), %s1198_s19, 512, %s1203_s23, %s1205_s30, %s1043_s22, %s1043_s22, %s1044_s27  }
 0x426 PF: > { %p903_p0 = scmp.ge.s32.totalorder %s1038_s29, 2  ;;  %s804_s8 = sand.u32 1, %s1018_s24  }
 0x427   : > { %s805_s10 = scalar_lea.sflag [#allocation3], %s804_s8 }
 0x428   : > { %p900_p1 = pnand %p903_p0, %p1132_p8 }
 0x42a   : > { %p901_p2 = pneg %p900_p1 }
 0x42c   : > { %1013 = dma.done.wait (%p901_p2), %s805_s10, 512  }
 0x42d   : > { %1015 = vsyncadd (%p901_p2), %s805_s10, 4294966784  ;;  %s20_s29 = sadd.s32 1, %s1038_s29   ;;  %s1260_s24 = smov %s1022_s25 }
 0x42e   : > { %p17_p3 = scmp.ge.s32.totalorder %s20_s29, 4   ;;  %s1261_s25 = smov %s1026_s26 }
 0x42f   : > { %s1262_s26 = smov %s1138_s14  ;;  %s1263_s27 = smov %s1034_s28 }
 0x430   : > { %s1264_s28 = smov %s1266_s9  ;;  %19 = sbr.rel (!%p17_p3) target bundleno = 4 (0x4), region = 83 }
 0x435   :  { %810 = vsyncpa [#allocation3], 1 }
 0x436   :  { %812 = vsyncpa [#allocation3 + $0x1], 1 }

</bundles_post_ra>
